<compile_context>
chip_gen: v6e
topology: v6e:2x2x1
jax: 0.10.0
libtpu: 0.0.40
codegen_flags: <defaults>
</compile_context>

<pallas_src>
import jax
import jax.numpy as jnp
from jax.experimental import pallas as pl
from jax.experimental.pallas import tpu as pltpu


def _round_up(a, b):
    return ((a + b - 1) // b) * b


def _geb_kernel(x_ref, v_ref, w1t_ref, w2t_ref, wat_ref, wbt_ref, b1_ref,
                wvt_ref, bv_ref, o_ref):
    """One node-tile of GatedEquivariantBlock(hidden, 1) forward.

    x_ref : (TN, H)       scalar node features
    v_ref : (TN, 3*H)     equivariant features, components packed along lanes
    o_ref : (TN, 3)       output vectors
    """
    H = w1t_ref.shape[0]
    w1t = w1t_ref[...]                                            # (H, H)
    w2t = w2t_ref[...]                                            # (H, 1)

    # Per-component projections; accumulate sum-of-squares for the norm and
    # keep the three skinny vec2 columns. No (3*tn, H) concat / copy.
    q = []
    vec1_sq = None
    for c in range(3):
        vc = v_ref[:, c * H:(c + 1) * H]                          # (TN, H) static slice
        pc = jnp.dot(vc, w1t, preferred_element_type=jnp.float32)  # (TN, H) f32
        qc = jnp.dot(vc, w2t, preferred_element_type=jnp.float32)  # (TN, 1) f32
        vec1_sq = pc * pc if vec1_sq is None else vec1_sq + pc * pc
        q.append(qc)
    vec1 = jnp.sqrt(vec1_sq)                                      # (TN, H) f32

    # update_net[0] without materialising the (TN, 2H) concat:
    #   [x, vec1] @ Wu1^T == x @ WA^T + vec1 @ WB^T
    u = (jnp.dot(x_ref[...], wat_ref[...], preferred_element_type=jnp.float32)
         + jnp.dot(vec1.astype(wbt_ref.dtype), wbt_ref[...],
                   preferred_element_type=jnp.float32)
         + b1_ref[...])
    u = u * jax.nn.sigmoid(u)                                     # SiLU (f32)

    # update_net[2]: only the "v" output row is used by EquiOutput
    # (the SiLU(x) gate branch is discarded), so compute just that row.
    v_scalar = (jnp.dot(u.astype(wvt_ref.dtype), wvt_ref[...],
                        preferred_element_type=jnp.float32)
                + bv_ref[...])                                    # (TN, 1)

    out = jnp.concatenate([v_scalar * q[0],
                           v_scalar * q[1],
                           v_scalar * q[2]], axis=-1)             # (TN, 3)
    o_ref[...] = out.astype(o_ref.dtype)


def equi_output(x, vec, params, *, tile_n=None, target_tile_bytes=4 << 20):
    """x: (N, H), vec: (N, 3, H) -> (N, 3) float32.

    tile_n: node tile. If None it is chosen so the vec tile is ~target_tile_bytes
            (amortises the ~0.35 us/step pipeline overhead), rounded to 16
            sublanes (bf16-safe), and capped so the grid has >= 2 parallel
            steps when N allows (v7x megacore). The ragged last block is
            handled by Pallas (no host-side pad), and vec is passed via a free
            contiguous reshape (no host-side transpose).
    dtype:  activations are used as given (pass bf16 from the producer to halve
            HBM traffic on any generation); matmuls accumulate in f32 and the
            epilogue stays f32. Weights are cast once to match x.dtype.
    """
    N, H = x.shape
    assert vec.shape == (N, 3, H)

    # Free contiguous collapse (no data movement), components packed along lanes.
    vec2d = vec.reshape(N, 3 * H)

    itemsize = jnp.dtype(x.dtype).itemsize
    SUB = 16                                        # sublane multiple (bf16-safe)

    if tile_n is None:
        per_row = 3 * H * itemsize                  # vec bytes dominate traffic
        tile_n = max(256, min(target_tile_bytes // max(per_row, 1), 4096))
    tn = max(SUB, min(_round_up(int(tile_n), SUB), _round_up(N, SUB)))
    # Keep >= 2 grid steps when possible so v7x can shard across its 2 TCs.
    half = max(SUB, _round_up(pl.cdiv(N, 2), SUB))
    tn = min(tn, half)
    grid = (pl.cdiv(N, tn),)

    w1, w2, wu1, b1, wu2, b2 = (params["w1"], params["w2"], params["wu1"],
                                params["b1"], params["wu2"], params["b2"])
    # Pre-transpose / pre-split weights once, outside the kernel; cast to the
    # activation dtype (tiny). Biases stay f32 (added to f32 accumulators).
    wdt = x.dtype
    w1t = w1.T.astype(wdt)                          # (H, H)  vec1_proj^T
    w2t = w2.T.astype(wdt)                          # (H, 1)  vec2_proj^T
    wat = wu1[:, :H].T.astype(wdt)                  # (H, H)  update_net[0] x-half
    wbt = wu1[:, H:].T.astype(wdt)                  # (H, H)  update_net[0] vec1-half
    wvt = wu2[1:2, :].T.astype(wdt)                 # (H, 1)  only the used row
    b1f = b1.astype(jnp.float32)                    # (1, H)
    bv = b2[:, 1:2].astype(jnp.float32)             # (1, 1)

    # VMEM budget: double-buffered input tiles + weights + f32 intermediates.
    est = (2 * tn * 4 * H * itemsize                # x + vec tiles, double-buffered
           + 2 * tn * 3 * 4                          # output tiles
           + 2 * (3 * H * H + 4 * H + 2) * itemsize  # weights / biases
           + 8 * tn * H * 4)                         # f32 intermediates headroom
    vmem_limit = int(min(64 << 20, max(32 << 20, 2 * est)))   # v7x-safe cap

    out = pl.pallas_call(
        _geb_kernel,
        out_shape=jax.ShapeDtypeStruct((N, 3), jnp.float32),
        grid_spec=pltpu.PrefetchScalarGridSpec(
            num_scalar_prefetch=0,
            grid=grid,
            in_specs=[
                pl.BlockSpec((tn, H), lambda i: (i, 0)),          # x
                pl.BlockSpec((tn, 3 * H), lambda i: (i, 0)),      # vec (lane-packed)
                pl.BlockSpec((H, H), lambda i: (0, 0)),           # W1^T
                pl.BlockSpec((H, 1), lambda i: (0, 0)),           # W2^T
                pl.BlockSpec((H, H), lambda i: (0, 0)),           # Wu1_x^T
                pl.BlockSpec((H, H), lambda i: (0, 0)),           # Wu1_vec1^T
                pl.BlockSpec((1, H), lambda i: (0, 0)),           # b1
                pl.BlockSpec((H, 1), lambda i: (0, 0)),           # Wu2[1]^T
                pl.BlockSpec((1, 1), lambda i: (0, 0)),           # b2[1]
            ],
            out_specs=pl.BlockSpec((tn, 3), lambda i: (i, 0)),
        ),
        compiler_params=pltpu.CompilerParams(
            dimension_semantics=("parallel",),
            vmem_limit_bytes=vmem_limit),
    )(x, vec2d, w1t, w2t, wat, wbt, b1f, wvt, bv)
    return out


def _xavier_uniform(key, shape):
    fan_out, fan_in = shape
    bound = (6.0 / (fan_in + fan_out)) ** 0.5
    return jax.random.uniform(key, shape, jnp.float32, -bound, bound)


def init_params(key, hidden_channels):
    H = hidden_channels
    k1, k2, k3, k4 = jax.random.split(key, 4)
    return {
        "w1": _xavier_uniform(k1, (H, H)),        # vec1_proj.weight
        "w2": _xavier_uniform(k2, (1, H)),        # vec2_proj.weight
        "wu1": _xavier_uniform(k3, (H, 2 * H)),   # update_net[0].weight
        "b1": jnp.zeros((1, H), jnp.float32),     # update_net[0].bias (filled with 0)
        "wu2": _xavier_uniform(k4, (2, H)),       # update_net[2].weight
        "b2": jnp.zeros((1, 2), jnp.float32),     # update_net[2].bias (filled with 0)
    }


def reference_forward(x, vec, p):
    # Pure-JAX reference mirroring the PyTorch module.
    vp = jnp.einsum("nch,kh->nck", vec, p["w1"])                 # vec1_proj
    vec1 = jnp.sqrt(jnp.sum(vp * vp, axis=-2))                   # norm over dim=-2
    vec2 = jnp.einsum("nch,kh->nck", vec, p["w2"])               # (N, 3, 1)
    h = jnp.concatenate([x, vec1], axis=-1)
    u = jax.nn.silu(h @ p["wu1"].T + p["b1"])
    out2 = u @ p["wu2"].T + p["b2"]                              # (N, 2)
    v = out2[:, 1:2][:, None, :] * vec2                          # (N, 3, 1)
    return jnp.squeeze(v)                                        # (N, 3)


if __name__ == "__main__":
    key = jax.random.PRNGKey(0)

    # --- small correctness check (single tile, adaptive tn) ----------------
    H, N = 32, 16
    kp, kx, kv = jax.random.split(key, 3)
    params = init_params(kp, H)
    x = jax.random.normal(kx, (N, H), jnp.float32)
    vec = jax.random.normal(kv, (N, 3, H), jnp.float32)

    out = jax.block_until_ready(equi_output(x, vec, params))
    ref = reference_forward(x, vec, params)
    assert out.shape == (N, 3)
    assert jnp.allclose(out, ref, atol=1e-4, rtol=1e-4), \
        f"max err {jnp.max(jnp.abs(out - ref))}"

    # --- multi-tile + ragged last block (N not a multiple of tile_n) -------
    N2 = 200
    kx2, kv2 = jax.random.split(jax.random.PRNGKey(1), 2)
    x2 = jax.random.normal(kx2, (N2, H), jnp.float32)
    vec2 = jax.random.normal(kv2, (N2, 3, H), jnp.float32)
    out2 = jax.block_until_ready(equi_output(x2, vec2, params, tile_n=64))
    ref2 = reference_forward(x2, vec2, params)
    assert out2.shape == (N2, 3)
    assert jnp.allclose(out2, ref2, atol=1e-4, rtol=1e-4), \
        f"max err {jnp.max(jnp.abs(out2 - ref2))}"

    print("KERNEL_OK")
</pallas_src>

<mosaic_0001>
module attributes {stable_mosaic.version = 11 : i64} {
  func.func @_geb_kernel(%arg0: i32, %arg1: memref<16x32xf32, #tpu.memory_space<vmem>>, %arg2: memref<16x96xf32, #tpu.memory_space<vmem>>, %arg3: memref<32x32xf32, #tpu.memory_space<vmem>>, %arg4: memref<32x1xf32, #tpu.memory_space<vmem>>, %arg5: memref<32x32xf32, #tpu.memory_space<vmem>>, %arg6: memref<32x32xf32, #tpu.memory_space<vmem>>, %arg7: memref<1x32xf32, #tpu.memory_space<vmem>>, %arg8: memref<32x1xf32, #tpu.memory_space<vmem>>, %arg9: memref<1x1xf32, #tpu.memory_space<vmem>>, %arg10: memref<16x3xf32, #tpu.memory_space<vmem>>) attributes {dimension_semantics = [#tpu.dimension_semantics<parallel>], iteration_bounds = array<i64: 1>, scalar_prefetch = 0 : i64, scratch_operands = 0 : i64, tpu.core_type = #tpu.core_type<tc>, window_params = [{transform_indices = @transform_0, window_bounds = array<i64: 16, 32>}, {transform_indices = @transform_1, window_bounds = array<i64: 16, 96>}, {pipeline_mode = #tpu.pipeline_mode<synchronous>, transform_indices = @transform_2, window_bounds = array<i64: 32, 32>}, {pipeline_mode = #tpu.pipeline_mode<synchronous>, transform_indices = @transform_3, window_bounds = array<i64: 32, 1>}, {pipeline_mode = #tpu.pipeline_mode<synchronous>, transform_indices = @transform_4, window_bounds = array<i64: 32, 32>}, {pipeline_mode = #tpu.pipeline_mode<synchronous>, transform_indices = @transform_5, window_bounds = array<i64: 32, 32>}, {pipeline_mode = #tpu.pipeline_mode<synchronous>, transform_indices = @transform_6, window_bounds = array<i64: 1, 32>}, {pipeline_mode = #tpu.pipeline_mode<synchronous>, transform_indices = @transform_7, window_bounds = array<i64: 32, 1>}, {pipeline_mode = #tpu.pipeline_mode<synchronous>, transform_indices = @transform_8, window_bounds = array<i64: 1, 1>}, {transform_indices = @transform_9, window_bounds = array<i64: 16, 3>}]} {
    %c0 = arith.constant 0 : index
    %c0_0 = arith.constant 0 : index
    %0 = vector.load %arg3[%c0, %c0_0] : memref<32x32xf32, #tpu.memory_space<vmem>>, vector<32x32xf32>
    %c0_1 = arith.constant 0 : index
    %c0_2 = arith.constant 0 : index
    %1 = vector.load %arg4[%c0_1, %c0_2] : memref<32x1xf32, #tpu.memory_space<vmem>>, vector<32x1xf32>
    %c0_3 = arith.constant 0 : index
    %c0_4 = arith.constant 0 : index
    %2 = vector.load %arg2[%c0_3, %c0_4] : memref<16x96xf32, #tpu.memory_space<vmem>>, vector<16x32xf32>
    %cst = arith.constant dense<0.000000e+00> : vector<16x32xf32>
    %3 = tpu.matmul %2, %0, %cst {dimension_numbers = #tpu.dot_dimension_numbers<[1], [0], [0], [1], [0, 0, 1, 1], [], []>} : vector<16x32xf32>, vector<32x32xf32>, vector<16x32xf32> -> vector<16x32xf32>
    %cst_5 = arith.constant dense<0.000000e+00> : vector<16x1xf32>
    %4 = tpu.matmul %2, %1, %cst_5 {dimension_numbers = #tpu.dot_dimension_numbers<[1], [0], [0], [1], [0, 0, 1, 1], [], []>} : vector<16x32xf32>, vector<32x1xf32>, vector<16x1xf32> -> vector<16x1xf32>
    %5 = arith.mulf %3, %3 : vector<16x32xf32>
    %c0_6 = arith.constant 0 : index
    %c32 = arith.constant 32 : index
    %6 = vector.load %arg2[%c0_6, %c32] : memref<16x96xf32, #tpu.memory_space<vmem>>, vector<16x32xf32>
    %cst_7 = arith.constant dense<0.000000e+00> : vector<16x32xf32>
    %7 = tpu.matmul %6, %0, %cst_7 {dimension_numbers = #tpu.dot_dimension_numbers<[1], [0], [0], [1], [0, 0, 1, 1], [], []>} : vector<16x32xf32>, vector<32x32xf32>, vector<16x32xf32> -> vector<16x32xf32>
    %cst_8 = arith.constant dense<0.000000e+00> : vector<16x1xf32>
    %8 = tpu.matmul %6, %1, %cst_8 {dimension_numbers = #tpu.dot_dimension_numbers<[1], [0], [0], [1], [0, 0, 1, 1], [], []>} : vector<16x32xf32>, vector<32x1xf32>, vector<16x1xf32> -> vector<16x1xf32>
    %9 = arith.mulf %7, %7 : vector<16x32xf32>
    %10 = arith.addf %5, %9 : vector<16x32xf32>
    %c0_9 = arith.constant 0 : index
    %c64 = arith.constant 64 : index
    %11 = vector.load %arg2[%c0_9, %c64] : memref<16x96xf32, #tpu.memory_space<vmem>>, vector<16x32xf32>
    %cst_10 = arith.constant dense<0.000000e+00> : vector<16x32xf32>
    %12 = tpu.matmul %11, %0, %cst_10 {dimension_numbers = #tpu.dot_dimension_numbers<[1], [0], [0], [1], [0, 0, 1, 1], [], []>} : vector<16x32xf32>, vector<32x32xf32>, vector<16x32xf32> -> vector<16x32xf32>
    %cst_11 = arith.constant dense<0.000000e+00> : vector<16x1xf32>
    %13 = tpu.matmul %11, %1, %cst_11 {dimension_numbers = #tpu.dot_dimension_numbers<[1], [0], [0], [1], [0, 0, 1, 1], [], []>} : vector<16x32xf32>, vector<32x1xf32>, vector<16x1xf32> -> vector<16x1xf32>
    %14 = arith.mulf %12, %12 : vector<16x32xf32>
    %15 = arith.addf %10, %14 : vector<16x32xf32>
    %16 = math.sqrt %15 : vector<16x32xf32>
    %c0_12 = arith.constant 0 : index
    %c0_13 = arith.constant 0 : index
    %17 = vector.load %arg1[%c0_12, %c0_13] : memref<16x32xf32, #tpu.memory_space<vmem>>, vector<16x32xf32>
    %c0_14 = arith.constant 0 : index
    %c0_15 = arith.constant 0 : index
    %18 = vector.load %arg5[%c0_14, %c0_15] : memref<32x32xf32, #tpu.memory_space<vmem>>, vector<32x32xf32>
    %cst_16 = arith.constant dense<0.000000e+00> : vector<16x32xf32>
    %19 = tpu.matmul %17, %18, %cst_16 {dimension_numbers = #tpu.dot_dimension_numbers<[1], [0], [0], [1], [0, 0, 1, 1], [], []>} : vector<16x32xf32>, vector<32x32xf32>, vector<16x32xf32> -> vector<16x32xf32>
    %c0_17 = arith.constant 0 : index
    %c0_18 = arith.constant 0 : index
    %20 = vector.load %arg6[%c0_17, %c0_18] : memref<32x32xf32, #tpu.memory_space<vmem>>, vector<32x32xf32>
    %cst_19 = arith.constant dense<0.000000e+00> : vector<16x32xf32>
    %21 = tpu.matmul %16, %20, %cst_19 {dimension_numbers = #tpu.dot_dimension_numbers<[1], [0], [0], [1], [0, 0, 1, 1], [], []>} : vector<16x32xf32>, vector<32x32xf32>, vector<16x32xf32> -> vector<16x32xf32>
    %22 = arith.addf %19, %21 : vector<16x32xf32>
    %c0_20 = arith.constant 0 : index
    %c0_21 = arith.constant 0 : index
    %23 = vector.load %arg7[%c0_20, %c0_21] : memref<1x32xf32, #tpu.memory_space<vmem>>, vector<1x32xf32>
    %24 = vector.broadcast %23 : vector<1x32xf32> to vector<16x32xf32>
    %25 = arith.addf %22, %24 : vector<16x32xf32>
    %26 = arith.negf %25 : vector<16x32xf32>
    %27 = math.exp %26 : vector<16x32xf32>
    %cst_22 = arith.constant 1.000000e+00 : f32
    %28 = vector.broadcast %cst_22 : f32 to vector<16x32xf32>
    %29 = arith.addf %28, %27 : vector<16x32xf32>
    %30 = arith.divf %28, %29 : vector<16x32xf32>
    %31 = arith.mulf %25, %30 : vector<16x32xf32>
    %c0_23 = arith.constant 0 : index
    %c0_24 = arith.constant 0 : index
    %32 = vector.load %arg8[%c0_23, %c0_24] : memref<32x1xf32, #tpu.memory_space<vmem>>, vector<32x1xf32>
    %cst_25 = arith.constant dense<0.000000e+00> : vector<16x1xf32>
    %33 = tpu.matmul %31, %32, %cst_25 {dimension_numbers = #tpu.dot_dimension_numbers<[1], [0], [0], [1], [0, 0, 1, 1], [], []>} : vector<16x32xf32>, vector<32x1xf32>, vector<16x1xf32> -> vector<16x1xf32>
    %c0_26 = arith.constant 0 : index
    %c0_27 = arith.constant 0 : index
    %34 = vector.load %arg9[%c0_26, %c0_27] : memref<1x1xf32, #tpu.memory_space<vmem>>, vector<1x1xf32>
    %35 = vector.broadcast %34 : vector<1x1xf32> to vector<16x1xf32>
    %36 = arith.addf %33, %35 : vector<16x1xf32>
    %37 = arith.mulf %36, %4 : vector<16x1xf32>
    %38 = arith.mulf %36, %8 : vector<16x1xf32>
    %39 = arith.mulf %36, %13 : vector<16x1xf32>
    %40 = tpu.concatenate %37, %38, %39 in 1 : vector<16x1xf32>, vector<16x1xf32>, vector<16x1xf32> -> vector<16x3xf32>
    %c0_28 = arith.constant 0 : index
    %c0_29 = arith.constant 0 : index
    %41 = vector.load %arg10[%c0_28, %c0_29] : memref<16x3xf32, #tpu.memory_space<vmem>>, vector<16x3xf32>
    tpu.vector_store %arg10[%c0_28, %c0_29], %40 {strides = array<i32>} : memref<16x3xf32, #tpu.memory_space<vmem>>, vector<16x3xf32>,
    return
  }
  func.func @transform_0(%arg0: i32) -> (i32, i32) {
    %c0_i32 = arith.constant 0 : i32
    %c0_i32_0 = arith.constant 0 : i32
    return %arg0, %c0_i32 : i32, i32
  }
  func.func @transform_1(%arg0: i32) -> (i32, i32) {
    %c0_i32 = arith.constant 0 : i32
    %c0_i32_0 = arith.constant 0 : i32
    return %arg0, %c0_i32 : i32, i32
  }
  func.func @transform_2(%arg0: i32) -> (i32, i32) {
    %c0_i32 = arith.constant 0 : i32
    %c0_i32_0 = arith.constant 0 : i32
    %c0_i32_1 = arith.constant 0 : i32
    return %c0_i32, %c0_i32_0 : i32, i32
  }
  func.func @transform_3(%arg0: i32) -> (i32, i32) {
    %c0_i32 = arith.constant 0 : i32
    %c0_i32_0 = arith.constant 0 : i32
    %c0_i32_1 = arith.constant 0 : i32
    return %c0_i32, %c0_i32_0 : i32, i32
  }
  func.func @transform_4(%arg0: i32) -> (i32, i32) {
    %c0_i32 = arith.constant 0 : i32
    %c0_i32_0 = arith.constant 0 : i32
    %c0_i32_1 = arith.constant 0 : i32
    return %c0_i32, %c0_i32_0 : i32, i32
  }
  func.func @transform_5(%arg0: i32) -> (i32, i32) {
    %c0_i32 = arith.constant 0 : i32
    %c0_i32_0 = arith.constant 0 : i32
    %c0_i32_1 = arith.constant 0 : i32
    return %c0_i32, %c0_i32_0 : i32, i32
  }
  func.func @transform_6(%arg0: i32) -> (i32, i32) {
    %c0_i32 = arith.constant 0 : i32
    %c0_i32_0 = arith.constant 0 : i32
    %c0_i32_1 = arith.constant 0 : i32
    return %c0_i32, %c0_i32_0 : i32, i32
  }
  func.func @transform_7(%arg0: i32) -> (i32, i32) {
    %c0_i32 = arith.constant 0 : i32
    %c0_i32_0 = arith.constant 0 : i32
    %c0_i32_1 = arith.constant 0 : i32
    return %c0_i32, %c0_i32_0 : i32, i32
  }
  func.func @transform_8(%arg0: i32) -> (i32, i32) {
    %c0_i32 = arith.constant 0 : i32
    %c0_i32_0 = arith.constant 0 : i32
    %c0_i32_1 = arith.constant 0 : i32
    return %c0_i32, %c0_i32_0 : i32, i32
  }
  func.func @transform_9(%arg0: i32) -> (i32, i32) {
    %c0_i32 = arith.constant 0 : i32
    %c0_i32_0 = arith.constant 0 : i32
    return %arg0, %c0_i32 : i32, i32
  }
}

</mosaic_0001>

<bundles_post_ra>
// kernel: tpu_custom_call.1
= control target key start
LH: loop header
LB: loop body
LE: loop exit
PB: predicated region body
PF: predicated region fallthrough
CT: control target
= control target key end

     0   :  { %s1312_s0 = inlined_call_operand.hbm [shape: f32[16,32], index: 0, kind: input, shape index: {}]   ;;  %s1313_s1 = inlined_call_operand.hbm [shape: f32[16,96], index: 1, kind: input, shape index: {}]   ;;  %s1314_s2 = inlined_call_operand.vmem [shape: f32[32,32], index: 2, kind: input, shape index: {}]   ;;  %s1315_s3 = inlined_call_operand.vmem [shape: f32[32,1], index: 3, kind: input, shape index: {}]   ;;  %s1316_s4 = inlined_call_operand.vmem [shape: f32[32,32], index: 4, kind: input, shape index: {}]   ;;  %s1317_s5 = inlined_call_operand.hbm [shape: f32[32,32], index: 5, kind: input, shape index: {}]   ;;  %s1318_s6 = inlined_call_operand.vmem [shape: f32[1,32], index: 6, kind: input, shape index: {}]   ;;  %s1319_s7 = inlined_call_operand.vmem [shape: f32[32,1], index: 7, kind: input, shape index: {}]   ;;  %s1320_s8 = inlined_call_operand.<no memory space> [shape: f32[1,1], index: 8, kind: input, shape index: {}]   ;;  %s1321_s9 = inlined_call_operand.vmem [shape: f32[16,3], index: 9, kind: output, shape index: {}]  }
   0x1   :  { %v14_v0 = vstv %s1320_s8 }
   0x2   :  { %15 = vst [vmem:[#allocation2] sm:$0x1] %v14_v0 }
   0x3   :  { %16 = vsyncpa [#allocation4], 0 }
   0x4   :  { %17 = vsyncpa [#allocation6], 0  ;;  %s1166_s11 = smov [#allocation5]   ;;  %s1167_s13 = smov [#allocation3]  }
   0x5   :  { %s35_s12 = sshll.u32 %s1166_s11, 4  ;;  %s23_s14 = sshll.u32 %s1167_s13, 4  ;;  %s36_s12 = int_to_ptr.vmem [resolvable:$true] %s35_s12  ;;  %s24_s14 = int_to_ptr.vmem [resolvable:$true] %s23_s14 }
   0x6   :  { %s1110_s15 = scalar_lea.vmem %s36_s12, 256  ;;  %p1115_p1 = scmp.lt.s32.totalorder %s36_s12, %s36_s12 }
   0x7   :  { %p1111_p0 = scmp.ne.s32.totalorder %s36_s12, %s1110_s15  ;;  %p1116_p2 = scmp.lt.s32.totalorder %s1110_s15, %s1110_s15 }
   0x9   :  { %p1117_p3 = por %p1116_p2, %p1115_p1 }
   0xb   :  { %p1118_p4 = pnand %p1117_p3, %p1111_p0 }
   0xd   :  { %1121 = shalt.err (!%p1118_p4)
}
   0xe   :  { %s1168_s16 = smov 128   ;;  %s1169_s17 = smov 8  }
   0xf   :  { %41 = dma.hbm_to_vmem [thread:$0]  %s1313_s1, 256, %s36_s12, [#allocation6], %s1168_s16, %s1168_s16, %s1169_s17  }
  0x10   :  { %s1130_s19 = scalar_lea.vmem %s24_s14, 256  ;;  %p1135_p6 = scmp.lt.s32.totalorder %s24_s14, %s24_s14 }
  0x11   :  { %p1131_p5 = scmp.ne.s32.totalorder %s24_s14, %s1130_s19  ;;  %p1136_p7 = scmp.lt.s32.totalorder %s1130_s19, %s1130_s19 }
  0x13   :  { %p1137_p8 = por %p1136_p7, %p1135_p6 }
  0x15   :  { %p1138_p9 = pnand %p1137_p8, %p1131_p5 }
  0x17   :  { %1141 = shalt.err (!%p1138_p9)
}
  0x18   :  { %29 = dma.hbm_to_vmem [thread:$0]  %s1312_s0, 256, %s24_s14, [#allocation4], %s1168_s16, %s1168_s16, %s1169_s17  }
  0x19   :  { %s1170_s22 = smov [#allocation7]  }
  0x1a   :  { %s53_s23 = sshll.u32 %s1170_s22, 4  ;;  %s54_s23 = int_to_ptr.vmem [resolvable:$true] %s53_s23 }
  0x1b   :  { %s1150_s24 = scalar_lea.vmem %s54_s23, 512  ;;  %p1155_p11 = scmp.lt.s32.totalorder %s54_s23, %s54_s23 }
  0x1c   :  { %p1151_p10 = scmp.ne.s32.totalorder %s54_s23, %s1150_s24  ;;  %p1156_p12 = scmp.lt.s32.totalorder %s1150_s24, %s1150_s24 }
  0x1e   :  { %p1157_p13 = por %p1156_p12, %p1155_p11 }
  0x20   :  { %p1158_p0 = pnand %p1157_p13, %p1151_p10 }
  0x22   :  { %1161 = shalt.err (!%p1158_p0)
}
  0x23   :  { %59 = dma.hbm_to_vmem [thread:$0]  %s1317_s5, 512, %s54_s23, [#allocation6], %s1168_s16, %s1168_s16, %s1169_s17  }
  0x24   :  { %1162 = dma.done.wait [#allocation4], 256  }
  0x25   :  { %1163 = vsyncadd [#allocation4], 4294967040 }
  0x26   :  { %1164 = dma.done.wait [#allocation6], 768  }
  0x27   :  { %1165 = vsyncadd [#allocation6], 4294966528  ;;  %v83_v1 = vld [vmem:[#allocation5] sm:$0xff]  ;;  %s1171_s27 = smov 96   ;;  %s1172_s28 = smov 64   ;;  %v84_v5 = vld [vmem:[#allocation5 + $0x8] sm:$0xff] }
  0x28   :  { %v78_v2 = vld [vmem:[%s1314_s2 + $0x18] sm:$0xff]  ;;  %244 = vrot.lane.b32.xlu0 %v83_v1, %s1171_s27  ;;  %406 = vrot.lane.b32.xlu1 %v83_v1, %s1172_s28  ;;  %v77_v4 = vld [vmem:[%s1314_s2 + $0x10] sm:$0xff]  ;;  %vm85_vm0 = vcmask 261120   ;;  %v582_v22 = vld [vmem:[#allocation3] sm:$0xff]  ;;  %vm891_vm5 = vcmask 7168   ;;  %vm894_vm6 = vcmask 15360  }
  0x29   :  { %v82_v3 = vld [vmem:[%s1315_s3 + $0x18] sm:$0xff]  ;;  %982 = vmatprep.subr.mxu0 %v78_v2  ;;  %v81_v6 = vld [vmem:[%s1315_s3 + $0x10] sm:$0xff]  ;;  %v76_v7 = vld [vmem:[%s1314_s2 + $0x8] sm:$0xff]  ;;  %990 = vmatprep.mubr.msk.f32.mxu0 %vm85_vm0, %v83_v1  ;;  %vm897_vm7 = vcmask 23552  }
  0x2a   :  { %993 = vmatprep.subr.mxu1 %v82_v3  ;;  %983 = vmatpush3.msra.mxu0 %v78_v2  ;;  %v80_v8 = vld [vmem:[%s1315_s3 + $0x8] sm:$0xff]  ;;  %v75_v9 = vld [vmem:[%s1314_s2] sm:$0xff]  ;;  %v587_v15 = vld [vmem:[%s1316_s4 + $0x18] sm:$0xff] }
  0x2b   :  { %994 = vmatpush3.msra.mxu1 %v82_v3  ;;  %984 = vmatprep.subr.mxu0 %v77_v4  ;;  %v79_v10 = vld [vmem:[%s1315_s3] sm:$0xff]  ;;  %v586_v17 = vld [vmem:[%s1316_s4 + $0x10] sm:$0xff]  ;;  %v585_v19 = vld [vmem:[%s1316_s4 + $0x8] sm:$0xff] }
  0x2c   :  { %995 = vmatprep.subr.mxu1 %v81_v6  ;;  %246 = vrot.lane.b32.xlu0 %v84_v5, %s1171_s27  ;;  %v591_v16 = vld [vmem:[#allocation7 + $0x18] sm:$0xff]  ;;  %v590_v18 = vld [vmem:[#allocation7 + $0x10] sm:$0xff]  ;;  %v589_v20 = vld [vmem:[#allocation7 + $0x8] sm:$0xff] }
  0x2d   :  { %408 = vrot.lane.b32.xlu1 %v84_v5, %s1172_s28  ;;  %985 = vmatpush3.msra.mxu0 %v77_v4  ;;  %v584_v21 = vld [vmem:[%s1316_s4] sm:$0xff]  ;;  %v583_v24 = vld [vmem:[#allocation3 + $0x8] sm:$0xff]  ;;  %v780_v51 = vld [vmem:[%s1319_s7 + $0x18] sm:$0xff] }
  0x2e   :  { %996 = vmatpush3.msra.mxu1 %v81_v6  ;;  %986 = vmatprep.subr.mxu0 %v76_v7  ;;  %v588_v23 = vld [vmem:[#allocation7] sm:$0xff]  ;;  %v779_v52 = vld [vmem:[%s1319_s7 + $0x10] sm:$0xff]  ;;  %v922_v63 = vld [vmem:[%s1318_s6] ss:$0 sm:$0xff]  ;;  %s1173_s6 = smov 1  }
  0x2f   :  { %997 = vmatprep.subr.mxu1 %v80_v8  ;;  %987 = vmatpush3.msra.mxu0 %v76_v7  ;;  %v778_v53 = vld [vmem:[%s1319_s7 + $0x8] sm:$0xff]  ;;  %v777_v54 = vld [vmem:[%s1319_s7] sm:$0xff]  ;;  %s1174_s7 = smov 2  }
  0x30   :  { %998 = vmatpush3.msra.mxu1 %v80_v8  ;;  %988 = vmatprep.subr.mxu0 %v75_v9 }
  0x31   :  { %989 = vmatpush3.msra.mxu0 %v75_v9  ;;  %999 = vmatprep.subr.mxu1 %v79_v10 }
  0x32   :  { %991 = vmatmul.mubr.msk.f32.vlgmr.msra.gmra.mxu0 %vm85_vm0, %v84_v5  ;;  %1000 = vmatpush3.msra.mxu1 %v79_v10 }
  0x33   :  { %1001 = vmatprep.mubr.msk.f32.mxu1 %vm85_vm0, %v83_v1  ;;  %1004 = vmatprep.subr.mxu0 %v78_v2 }
  0x34   :  { %1015 = vmatprep.subr.mxu1 %v82_v3  ;;  %1002 = vmatmul.mubr.msk.f32.vlgmr.msra.gmra.mxu1 %vm85_vm0, %v84_v5 }
  0x35   :  { %1005 = vmatpush3.msra.mxu0 %v78_v2  ;;  %1016 = vmatpush3.msra.mxu1 %v82_v3 }
  0x36   :  { %1006 = vmatprep.subr.mxu0 %v77_v4  ;;  %1017 = vmatprep.subr.mxu1 %v81_v6 }
  0x37   :  { %1007 = vmatpush3.msra.mxu0 %v77_v4  ;;  %1018 = vmatpush3.msra.mxu1 %v81_v6 }
  0x38   :  { %1008 = vmatprep.subr.mxu0 %v76_v7  ;;  %1019 = vmatprep.subr.mxu1 %v80_v8 }
  0x39   :  { %1009 = vmatpush3.msra.mxu0 %v76_v7  ;;  %1020 = vmatpush3.msra.mxu1 %v80_v8 }
  0x3a   :  { %1010 = vmatprep.subr.mxu0 %v75_v9  ;;  %1021 = vmatprep.subr.mxu1 %v79_v10 }
  0x3b   :  { %1011 = vmatpush3.msra.mxu0 %v75_v9  ;;  %1022 = vmatpush3.msra.mxu1 %v79_v10 }
  0x3c   :  { %1026 = vmatprep.subr.mxu0 %v78_v2  ;;  %1037 = vmatprep.subr.mxu1 %v82_v3 }
  0x9a   :  { %v245_v11 = vpop.permute.xlu0 %244  ;;  %v407_v13 = vpop.permute.xlu1 %406 }
  0x9b   :  { %1012 = vmatprep.mubr.msk.f32.mxu0 %vm85_vm0, %v245_v11  ;;  %1023 = vmatprep.mubr.msk.f32.mxu1 %vm85_vm0, %v245_v11 }
  0x9e   :  { %v247_v12 = vpop.permute.xlu0 %246 }
  0x9f   :  { %1013 = vmatmul.mubr.msk.f32.vlgmr.msra.gmra.mxu0 %vm85_vm0, %v247_v12  ;;  %1024 = vmatmul.mubr.msk.f32.vlgmr.msra.gmra.mxu1 %vm85_vm0, %v247_v12  ;;  %v409_v14 = vpop.permute.xlu1 %408 }
  0xa0   :  { %1027 = vmatpush3.msra.mxu0 %v78_v2  ;;  %1038 = vmatpush3.msra.mxu1 %v82_v3 }
  0xa1   :  { %1028 = vmatprep.subr.mxu0 %v77_v4  ;;  %1039 = vmatprep.subr.mxu1 %v81_v6 }
  0xa2   :  { %1029 = vmatpush3.msra.mxu0 %v77_v4  ;;  %1040 = vmatpush3.msra.mxu1 %v81_v6 }
  0xa3   :  { %1030 = vmatprep.subr.mxu0 %v76_v7  ;;  %1034 = vmatprep.mubr.msk.f32.mxu0 %vm85_vm0, %v407_v13 }
  0xa4   :  { %1041 = vmatprep.subr.mxu1 %v80_v8  ;;  %1045 = vmatprep.mubr.msk.f32.mxu1 %vm85_vm0, %v407_v13 }
  0xa5   :  { %1031 = vmatpush3.msra.mxu0 %v76_v7  ;;  %1042 = vmatpush3.msra.mxu1 %v80_v8 }
  0xa6   :  { %1032 = vmatprep.subr.mxu0 %v75_v9  ;;  %1043 = vmatprep.subr.mxu1 %v79_v10 }
  0xa7   :  { %1033 = vmatpush3.msra.mxu0 %v75_v9  ;;  %1044 = vmatpush3.msra.mxu1 %v79_v10 }
  0xa8   :  { %1035 = vmatmul.mubr.msk.f32.vlgmr.msra.gmra.mxu0 %vm85_vm0, %v409_v14  ;;  %1046 = vmatmul.mubr.msk.f32.vlgmr.msra.gmra.mxu1 %vm85_vm0, %v409_v14 }
  0xa9   :  { %1059 = vmatprep.subr.mxu1 %v587_v15  ;;  %1048 = vmatprep.subr.mxu0 %v591_v16 }
  0xaa   :  { %1060 = vmatpush3.msra.mxu1 %v587_v15  ;;  %1049 = vmatpush3.msra.mxu0 %v591_v16  ;;  %v925_v16 = vld [vmem:[#allocation2] ss:$0 sm:$0xff] }
  0xab   :  { %1061 = vmatprep.subr.mxu1 %v586_v17  ;;  %1050 = vmatprep.subr.mxu0 %v590_v18 }
  0xac   :  { %1062 = vmatpush3.msra.mxu1 %v586_v17  ;;  %1051 = vmatpush3.msra.mxu0 %v590_v18 }
  0xad   :  { %1063 = vmatprep.subr.mxu1 %v585_v19  ;;  %1052 = vmatprep.subr.mxu0 %v589_v20 }
  0xae   :  { %1064 = vmatpush3.msra.mxu1 %v585_v19  ;;  %1053 = vmatpush3.msra.mxu0 %v589_v20 }
  0xaf   :  { %1065 = vmatprep.subr.mxu1 %v584_v21  ;;  %1067 = vmatprep.mubr.msk.f32.mxu1 %vm85_vm0, %v582_v22 }
  0xb0   :  { %1066 = vmatpush3.msra.mxu1 %v584_v21  ;;  %1054 = vmatprep.subr.mxu0 %v588_v23 }
  0xb1   :  { %1068 = vmatmul.mubr.msk.f32.vlgmr.msra.gmra.mxu1 %vm85_vm0, %v583_v24  ;;  %1055 = vmatpush3.msra.mxu0 %v588_v23 }
  0xb2   :  { %1070 = vmatprep.subr.mxu0 %v780_v51 }
  0xf2   :  { %v992_v25 = vpop.f32.mrf.mxu0 }
  0xf3   :  { %v243_v30 = vmul.f32 %v992_v25, %v992_v25 }
  0xf4   :  { %v158_v26 = vpop.f32.mrf.mxu0  ;;  %v1003_v55 = vpop.f32.mrf.mxu1 }
  0xf5   :  { %v242_v33 = vmul.f32 %v158_v26, %v158_v26 }
  0xf6   :  { %v233_v56 = vpop.f32.mrf.mxu1 }
 0x15f   :  { %v1014_v27 = vpop.f32.mrf.mxu0  ;;  %v1025_v57 = vpop.f32.mrf.mxu1 }
 0x160   :  { %v403_v29 = vmul.f32 %v1014_v27, %v1014_v27 }
 0x161   :  { %v318_v28 = vpop.f32.mrf.mxu0  ;;  %v393_v58 = vpop.f32.mrf.mxu1 }
 0x162   :  { %v402_v31 = vmul.f32 %v318_v28, %v318_v28  ;;  %v405_v34 = vadd.f32 %v403_v29, %v243_v30 }
 0x164   :  { %v404_v37 = vadd.f32 %v402_v31, %v242_v33 }
 0x168   :  { %v1036_v32 = vpop.f32.mrf.mxu0  ;;  %v1047_v59 = vpop.f32.mrf.mxu1 }
 0x169   :  { %v565_v35 = vmul.f32 %v1036_v32, %v1036_v32 }
 0x16a   :  { %v480_v36 = vpop.f32.mrf.mxu0  ;;  %v555_v60 = vpop.f32.mrf.mxu1 }
 0x16b   :  { %v567_v38 = vadd.f32 %v565_v35, %v405_v34  ;;  %v564_v39 = vmul.f32 %v480_v36, %v480_v36 }
 0x16d   :  { %1090 = vrsqrt.f32 %v567_v38  ;;  %v566_v40 = vadd.f32 %v564_v39, %v404_v37  ;;  %vm577_vm1 = vcmp.eq.f32.partialorder %v567_v38, inf  ;;  %v580_v48 = vand.u32 2147483648, %v567_v38 }
 0x16e   :  { %vm579_vm4 = vcmp.eq.f32.partialorder %v567_v38, 0.0 }
 0x16f   :  { %1092 = vrsqrt.f32 %v566_v40  ;;  %vm570_vm2 = vcmp.eq.f32.partialorder %v566_v40, inf  ;;  %v573_v45 = vand.u32 2147483648, %v566_v40  ;;  %vm572_vm3 = vcmp.eq.f32.partialorder %v566_v40, 0.0 }
 0x171   :  { %v1069_v61 = vpop.f32.mrf.mxu1 }
 0x173   :  { %v745_v1 = vpop.f32.mrf.mxu1 }
 0x17a   :  { %v1091_v41 = vpop.eup %1090 }
 0x17b   :  { %v576_v42 = vmul.f32 %v1091_v41, %v567_v38 }
 0x17c   :  { %v1093_v43 = vpop.eup %1092 }
 0x17d   :  { %v569_v44 = vmul.f32 %v1093_v43, %v566_v40  ;;  %v578_v46 = vsel %vm577_vm1, %v567_v38, %v576_v42 }
 0x17e   :  { %v581_v50 = vsel %vm579_vm4, %v580_v48, %v578_v46 }
 0x17f   :  { %v571_v47 = vsel %vm570_vm2, %v566_v40, %v569_v44 }
 0x180   :  { %v574_v49 = vsel %vm572_vm3, %v573_v45, %v571_v47 }
 0x181   :  { %1056 = vmatprep.mubr.msk.f32.mxu0 %vm85_vm0, %v574_v49 }
 0x182   :  { %1057 = vmatmul.mubr.msk.f32.vlgmr.msra.gmra.mxu0 %vm85_vm0, %v581_v50 }
 0x183   :  { %1071 = vmatpush3.msra.mxu0 %v780_v51 }
 0x184   :  { %1072 = vmatprep.subr.mxu0 %v779_v52 }
 0x185   :  { %1073 = vmatpush3.msra.mxu0 %v779_v52 }
 0x186   :  { %1074 = vmatprep.subr.mxu0 %v778_v53 }
 0x187   :  { %1075 = vmatpush3.msra.mxu0 %v778_v53 }
 0x188   :  { %1076 = vmatprep.subr.mxu0 %v777_v54 }
 0x189   :  { %1077 = vmatpush3.msra.mxu0 %v777_v54 }
 0x242   :  { %v1058_v62 = vpop.f32.mrf.mxu0 }
 0x243   :  { %v751_v0 = vadd.f32 %v1069_v61, %v1058_v62 }
 0x244   :  { %v664_v2 = vpop.f32.mrf.mxu0 }
 0x245   :  { %v762_v3 = vadd.f32 %v922_v63, %v751_v0  ;;  %v746_v4 = vadd.f32 %v745_v1, %v664_v2 }
 0x247   :  { %v924_v5 = vmul.f32 -1.442695, %v762_v3  ;;  %v761_v6 = vadd.f32 %v922_v63, %v746_v4 }
 0x249   :  { %1094 = vpow2.f32 %v924_v5  ;;  %v923_v7 = vmul.f32 -1.442695, %v761_v6 }
 0x24b   :  { %1096 = vpow2.f32 %v923_v7 }
 0x256   :  { %v1095_v8 = vpop.eup %1094 }
 0x257   :  { %v770_v9 = vadd.f32 1.0, %v1095_v8 }
 0x258   :  { %v1097_v10 = vpop.eup %1096 }
 0x259   :  { %v769_v11 = vadd.f32 1.0, %v1097_v10  ;;  %1098 = vrcp.f32 %v770_v9 }
 0x25b   :  { %1100 = vrcp.f32 %v769_v11 }
 0x266   :  { %v1099_v12 = vpop.eup %1098 }
 0x267   :  { %v776_v15 = vmul.f32 %v1099_v12, %v762_v3 }
 0x268   :  { %v1101_v13 = vpop.eup %1100 }
 0x269   :  { %v775_v14 = vmul.f32 %v1101_v13, %v761_v6 }
 0x26b   :  { %1078 = vmatprep.mubr.msk.f32.mxu0 %vm85_vm0, %v775_v14 }
 0x26c   :  { %1079 = vmatmul.mubr.msk.f32.vlgmr.msra.gmra.mxu0 %vm85_vm0, %v776_v15 }
 0x32c   :  { %v1080_v17 = vpop.f32.mrf.mxu0 }
 0x32d   :  { %v866_v18 = vadd.f32 %v1080_v17, %v925_v16 }
 0x32e   :  { %v860_v19 = vpop.f32.mrf.mxu0 }
 0x32f   :  { %v861_v20 = vadd.f32 %v925_v16, %v860_v19  ;;  %v872_v21 = vmul.f32 %v1025_v57, %v866_v18  ;;  %v874_v23 = vmul.f32 %v1047_v59, %v866_v18  ;;  %v870_v26 = vmul.f32 %v1003_v55, %v866_v18 }
 0x331   :  { %879 = vrot.lane.b32.xlu1 %v872_v21, %s1173_s6  ;;  %v871_v22 = vmul.f32 %v861_v20, %v393_v58  ;;  %v873_v24 = vmul.f32 %v861_v20, %v555_v60  ;;  %v869_v28 = vmul.f32 %v861_v20, %v233_v56 }
 0x333   :  { %877 = vrot.lane.b32.xlu0 %v871_v22, %s1173_s6 }
 0x335   :  { %887 = vrot.lane.b32.xlu1 %v874_v23, %s1174_s7 }
 0x337   :  { %885 = vrot.lane.b32.xlu0 %v873_v24, %s1174_s7 }
 0x3a3   :  { %v880_v25 = vpop.permute.xlu1 %879 }
 0x3a4   :  { %v893_v29 = vsel %vm891_vm5, %v870_v26, %v880_v25 }
 0x3a5   :  { %v878_v27 = vpop.permute.xlu0 %877 }
 0x3a6   :  { %v892_v32 = vsel %vm891_vm5, %v869_v28, %v878_v27 }
 0x3a7   :  { %v888_v30 = vpop.permute.xlu1 %887 }
 0x3a8   :  { %v896_v31 = vsel %vm894_vm6, %v893_v29, %v888_v30 }
 0x3a9   :  { %899 = vst.msk [vmem:[%s1321_s9 + $0x8] sm:$0xff] %vm897_vm7, %v896_v31  ;;  %v886_v33 = vpop.permute.xlu0 %885 }
 0x3aa   :  { %v895_v34 = vsel %vm894_vm6, %v892_v32, %v886_v33 }
 0x3ab   :  { %898 = vst.msk [vmem:[%s1321_s9] sm:$0xff] %vm897_vm7, %v895_v34 }
 0x3ac   :  { %904 = vsyncpa [#allocation4], 1 }
 0x3ad   :  { %905 = vsyncpa [#allocation6], 1 }

</bundles_post_ra>
